<compile_context>
chip_gen: v7x
topology: tpu7x:2x2x1
jax: 0.10.0
libtpu: 0.0.40
codegen_flags: <defaults>
</compile_context>

<pallas_src>
import functools

import jax
import jax.numpy as jnp
from jax.experimental import pallas as pl
from jax.experimental.pallas import tpu as pltpu


def _round_up(n: int, m: int) -> int:
    return ((n + m - 1) // m) * m


def _nn4_kernel(*refs, apply_dropout: bool):
    refs = list(refs)
    x_ref = refs.pop(0)
    if apply_dropout:
        r2_ref = refs.pop(0)
        r3_ref = refs.pop(0)
    (w1_ref, b1_ref, w2_ref, b2_ref, w3_ref, b3_ref,
     w4t_ref, b4t_ref, o_ref) = refs

    # fc1 + relu   (bf16 x / bf16 w1 on the MXU, f32 accumulation)
    h = jnp.dot(x_ref[...], w1_ref[...],
                preferred_element_type=jnp.float32) + b1_ref[...]
    h = jnp.maximum(h, 0.0)

    # fc2 + relu + dropout(0.5): single-bit keep test, ReLU folded into the where.
    h = jnp.dot(h, w2_ref[...],
                preferred_element_type=jnp.float32) + b2_ref[...]
    if apply_dropout:
        keep = (r2_ref[...] >> 31) == 0                      # P(keep) = 0.5
        h = jnp.where(jnp.logical_and(keep, h > 0.0), h * 2.0, 0.0)
    else:
        h = jnp.maximum(h, 0.0)

    # fc3 + relu + dropout(0.5)
    h = jnp.dot(h, w3_ref[...],
                preferred_element_type=jnp.float32) + b3_ref[...]
    if apply_dropout:
        keep = (r3_ref[...] >> 31) == 0
        h = jnp.where(jnp.logical_and(keep, h > 0.0), h * 2.0, 0.0)
    else:
        h = jnp.maximum(h, 0.0)

    # fc4 in transposed orientation: (2, 36) . (tile, 36)^T -> (2, tile)
    # (classes on sublanes, batch on lanes) so the final store is lane-dense.
    logits_t = jax.lax.dot_general(
        w4t_ref[...], h,
        dimension_numbers=(((1,), (1,)), ((), ())),
        preferred_element_type=jnp.float32) + b4t_ref[...]

    # log_softmax over the class axis (axis 0 in the transposed layout).
    m = jnp.max(logits_t, axis=0, keepdims=True)
    lse = m + jnp.log(jnp.sum(jnp.exp(logits_t - m), axis=0, keepdims=True))
    o_ref[...] = (logits_t - lse).astype(o_ref.dtype)


def nn4_dropout_forward(x, params, key=None, *, training=True, block_rows=1024):
    """Forward pass of NN4_Dropout.

    x:      (B, 267) float32
    params: dict with w1..w4 stored as (in, out) and b1..b4 as (1, out), float32
    key:    jax.random key for the dropout masks (used only when training=True)
    """
    B, F = x.shape
    assert F == 267

    # Batch tile: multiple of 8 sublanes; default 1024 rows keeps the
    # double-buffered tiles far below VMEM limits on every generation
    # (including v7x's smaller 64 MiB VMEM).
    tile = _round_up(min(int(block_rows), _round_up(B, 8)), 8)
    Bp = _round_up(B, tile)
    grid = (Bp // tile,)

    # bf16 input halves the dominant HBM stream; MXU still accumulates in f32.
    x_bf = x.astype(jnp.bfloat16)
    if Bp != B:
        x_bf = jnp.pad(x_bf, ((0, Bp - B), (0, 0)))

    w1 = params["w1"].astype(jnp.bfloat16)
    b1 = params["b1"]
    w2, b2 = params["w2"], params["b2"]
    w3, b3 = params["w3"], params["b3"]
    w4t = params["w4"].T                 # (2, 36) for the transposed final matmul
    b4t = params["b4"].reshape(2, 1)     # (2, 1)

    batch_map = lambda i: (i, 0)
    const_map = lambda i: (0, 0)

    in_specs = [pl.BlockSpec((tile, 267), batch_map)]
    inputs = [x_bf]

    if training:
        if key is None:
            key = jax.random.PRNGKey(0)
        k2, k3 = jax.random.split(key)
        # Host-side random words (per row, so tiling/megacore sharding cannot
        # repeat masks). pltpu.prng_* is avoided: no interpret-mode lowering.
        r2 = jax.random.bits(k2, (Bp, 36), dtype=jnp.uint32)
        r3 = jax.random.bits(k3, (Bp, 36), dtype=jnp.uint32)
        in_specs += [pl.BlockSpec((tile, 36), batch_map)] * 2
        inputs += [r2, r3]

    # Weights/biases: constant block index -> fetched once, stay resident in
    # VMEM across all batch tiles (per-step HBM traffic is the x tile only).
    in_specs += [
        pl.BlockSpec((267, 36), const_map), pl.BlockSpec((1, 36), const_map),
        pl.BlockSpec((36, 36), const_map), pl.BlockSpec((1, 36), const_map),
        pl.BlockSpec((36, 36), const_map), pl.BlockSpec((1, 36), const_map),
        pl.BlockSpec((2, 36), const_map), pl.BlockSpec((2, 1), const_map),
    ]
    inputs += [w1, b1, w2, b2, w3, b3, w4t, b4t]

    out_t = pl.pallas_call(
        functools.partial(_nn4_kernel, apply_dropout=training),
        out_shape=jax.ShapeDtypeStruct((2, Bp), jnp.float32),
        grid=grid,
        in_specs=in_specs,
        out_specs=pl.BlockSpec((2, tile), lambda i: (0, i)),
        compiler_params=pltpu.CompilerParams(
            dimension_semantics=("parallel",)),  # shard batch tiles across TCs (v7x)
    )(*inputs)

    return out_t.T[:B]  # (B, 2) log-probabilities


def init_params(key):
    """Deterministic init matching the PyTorch module's layer shapes.
    Weights stored as (in, out); biases as (1, out) for 2-D VMEM tiles."""
    dims = [(267, 36), (36, 36), (36, 36), (36, 2)]
    params = {}
    keys = jax.random.split(key, 2 * len(dims))
    for i, (fan_in, fan_out) in enumerate(dims):
        bound = 1.0 / jnp.sqrt(float(fan_in))
        w = jax.random.uniform(keys[2 * i], (fan_in, fan_out),
                               minval=-bound, maxval=bound, dtype=jnp.float32)
        b = jax.random.uniform(keys[2 * i + 1], (1, fan_out),
                               minval=-bound, maxval=bound, dtype=jnp.float32)
        params[f"w{i + 1}"] = w
        params[f"b{i + 1}"] = b
    return params


if __name__ == "__main__":
    key = jax.random.PRNGKey(0)
    pkey, xkey, dkey = jax.random.split(key, 3)

    params = init_params(pkey)

    B = 250  # not a multiple of the tile -> exercises batch padding + 2 grid steps
    x = jax.random.normal(xkey, (B, 267), dtype=jnp.float32)

    out = nn4_dropout_forward(x, params, dkey, training=True, block_rows=128)
    out = jax.block_until_ready(out)

    assert out.shape == (B, 2)
    # log_softmax rows must exponentiate to probabilities summing to ~1
    row_sums = jnp.sum(jnp.exp(out), axis=1)
    assert bool(jnp.all(jnp.abs(row_sums - 1.0) < 1e-4))
    # log-probabilities are non-positive
    assert bool(jnp.all(out <= 1e-6))

    print("KERNEL_OK")
</pallas_src>

<mosaic_0001>
module attributes {stable_mosaic.version = 11 : i64} {
  func.func @_nn4_kernel(%arg0: i32, %arg1: memref<128x267xbf16, #tpu.memory_space<vmem>>, %arg2: memref<128x36xi32, #tpu.memory_space<vmem>>, %arg3: memref<128x36xi32, #tpu.memory_space<vmem>>, %arg4: memref<267x36xbf16, #tpu.memory_space<vmem>>, %arg5: memref<1x36xf32, #tpu.memory_space<vmem>>, %arg6: memref<36x36xf32, #tpu.memory_space<vmem>>, %arg7: memref<1x36xf32, #tpu.memory_space<vmem>>, %arg8: memref<36x36xf32, #tpu.memory_space<vmem>>, %arg9: memref<1x36xf32, #tpu.memory_space<vmem>>, %arg10: memref<2x36xf32, #tpu.memory_space<vmem>>, %arg11: memref<2x1xf32, #tpu.memory_space<vmem>>, %arg12: memref<2x128xf32, #tpu.memory_space<vmem>>) attributes {dimension_semantics = [#tpu.dimension_semantics<parallel>], iteration_bounds = array<i64: 2>, scalar_prefetch = 0 : i64, scratch_operands = 0 : i64, tpu.core_type = #tpu.core_type<tc>, window_params = [{transform_indices = @transform_0, window_bounds = array<i64: 128, 267>}, {transform_indices = @transform_1, window_bounds = array<i64: 128, 36>}, {transform_indices = @transform_2, window_bounds = array<i64: 128, 36>}, {pipeline_mode = #tpu.pipeline_mode<synchronous>, transform_indices = @transform_3, window_bounds = array<i64: 267, 36>}, {pipeline_mode = #tpu.pipeline_mode<synchronous>, transform_indices = @transform_4, window_bounds = array<i64: 1, 36>}, {pipeline_mode = #tpu.pipeline_mode<synchronous>, transform_indices = @transform_5, window_bounds = array<i64: 36, 36>}, {pipeline_mode = #tpu.pipeline_mode<synchronous>, transform_indices = @transform_6, window_bounds = array<i64: 1, 36>}, {pipeline_mode = #tpu.pipeline_mode<synchronous>, transform_indices = @transform_7, window_bounds = array<i64: 36, 36>}, {pipeline_mode = #tpu.pipeline_mode<synchronous>, transform_indices = @transform_8, window_bounds = array<i64: 1, 36>}, {pipeline_mode = #tpu.pipeline_mode<synchronous>, transform_indices = @transform_9, window_bounds = array<i64: 2, 36>}, {pipeline_mode = #tpu.pipeline_mode<synchronous>, transform_indices = @transform_10, window_bounds = array<i64: 2, 1>}, {transform_indices = @transform_11, window_bounds = array<i64: 2, 128>}]} {
    %c0 = arith.constant 0 : index
    %c0_0 = arith.constant 0 : index
    %0 = vector.load %arg1[%c0, %c0_0] : memref<128x267xbf16, #tpu.memory_space<vmem>>, vector<128x267xbf16>
    %c0_1 = arith.constant 0 : index
    %c0_2 = arith.constant 0 : index
    %1 = vector.load %arg4[%c0_1, %c0_2] : memref<267x36xbf16, #tpu.memory_space<vmem>>, vector<267x36xbf16>
    %cst = arith.constant dense<0.000000e+00> : vector<128x36xf32>
    %2 = tpu.matmul %0, %1, %cst {dimension_numbers = #tpu.dot_dimension_numbers<[1], [0], [0], [1], [0, 0, 1, 1], [], []>} : vector<128x267xbf16>, vector<267x36xbf16>, vector<128x36xf32> -> vector<128x36xf32>
    %c0_3 = arith.constant 0 : index
    %c0_4 = arith.constant 0 : index
    %3 = vector.load %arg5[%c0_3, %c0_4] : memref<1x36xf32, #tpu.memory_space<vmem>>, vector<1x36xf32>
    %4 = vector.broadcast %3 : vector<1x36xf32> to vector<128x36xf32>
    %5 = arith.addf %2, %4 : vector<128x36xf32>
    %cst_5 = arith.constant 0.000000e+00 : f32
    %6 = vector.broadcast %cst_5 : f32 to vector<128x36xf32>
    %7 = arith.maximumf %5, %6 : vector<128x36xf32>
    %c0_6 = arith.constant 0 : index
    %c0_7 = arith.constant 0 : index
    %8 = vector.load %arg6[%c0_6, %c0_7] : memref<36x36xf32, #tpu.memory_space<vmem>>, vector<36x36xf32>
    %cst_8 = arith.constant dense<0.000000e+00> : vector<128x36xf32>
    %9 = tpu.matmul %7, %8, %cst_8 {dimension_numbers = #tpu.dot_dimension_numbers<[1], [0], [0], [1], [0, 0, 1, 1], [], []>} : vector<128x36xf32>, vector<36x36xf32>, vector<128x36xf32> -> vector<128x36xf32>
    %c0_9 = arith.constant 0 : index
    %c0_10 = arith.constant 0 : index
    %10 = vector.load %arg7[%c0_9, %c0_10] : memref<1x36xf32, #tpu.memory_space<vmem>>, vector<1x36xf32>
    %11 = vector.broadcast %10 : vector<1x36xf32> to vector<128x36xf32>
    %12 = arith.addf %9, %11 : vector<128x36xf32>
    %c0_11 = arith.constant 0 : index
    %c0_12 = arith.constant 0 : index
    %13 = vector.load %arg2[%c0_11, %c0_12] : memref<128x36xi32, #tpu.memory_space<vmem>>, vector<128x36xi32>
    %c31_i32 = arith.constant 31 : i32
    %14 = vector.broadcast %c31_i32 : i32 to vector<128x36xi32>
    %15 = arith.shrui %13, %14 : vector<128x36xi32>
    %c0_i32 = arith.constant 0 : i32
    %16 = vector.broadcast %c0_i32 : i32 to vector<128x36xi32>
    %17 = arith.cmpi eq, %15, %16 : vector<128x36xi32>
    %cst_13 = arith.constant 0.000000e+00 : f32
    %18 = vector.broadcast %cst_13 : f32 to vector<128x36xf32>
    %19 = arith.cmpf ogt, %12, %18 : vector<128x36xf32>
    %20 = arith.andi %17, %19 : vector<128x36xi1>
    %cst_14 = arith.constant 2.000000e+00 : f32
    %21 = vector.broadcast %cst_14 : f32 to vector<128x36xf32>
    %22 = arith.mulf %12, %21 : vector<128x36xf32>
    %cst_15 = arith.constant 0.000000e+00 : f32
    %23 = vector.broadcast %cst_15 : f32 to vector<128x36xf32>
    %24 = arith.select %20, %22, %23 : vector<128x36xi1>, vector<128x36xf32>
    %c0_16 = arith.constant 0 : index
    %c0_17 = arith.constant 0 : index
    %25 = vector.load %arg8[%c0_16, %c0_17] : memref<36x36xf32, #tpu.memory_space<vmem>>, vector<36x36xf32>
    %cst_18 = arith.constant dense<0.000000e+00> : vector<128x36xf32>
    %26 = tpu.matmul %24, %25, %cst_18 {dimension_numbers = #tpu.dot_dimension_numbers<[1], [0], [0], [1], [0, 0, 1, 1], [], []>} : vector<128x36xf32>, vector<36x36xf32>, vector<128x36xf32> -> vector<128x36xf32>
    %c0_19 = arith.constant 0 : index
    %c0_20 = arith.constant 0 : index
    %27 = vector.load %arg9[%c0_19, %c0_20] : memref<1x36xf32, #tpu.memory_space<vmem>>, vector<1x36xf32>
    %28 = vector.broadcast %27 : vector<1x36xf32> to vector<128x36xf32>
    %29 = arith.addf %26, %28 : vector<128x36xf32>
    %c0_21 = arith.constant 0 : index
    %c0_22 = arith.constant 0 : index
    %30 = vector.load %arg3[%c0_21, %c0_22] : memref<128x36xi32, #tpu.memory_space<vmem>>, vector<128x36xi32>
    %c31_i32_23 = arith.constant 31 : i32
    %31 = vector.broadcast %c31_i32_23 : i32 to vector<128x36xi32>
    %32 = arith.shrui %30, %31 : vector<128x36xi32>
    %c0_i32_24 = arith.constant 0 : i32
    %33 = vector.broadcast %c0_i32_24 : i32 to vector<128x36xi32>
    %34 = arith.cmpi eq, %32, %33 : vector<128x36xi32>
    %cst_25 = arith.constant 0.000000e+00 : f32
    %35 = vector.broadcast %cst_25 : f32 to vector<128x36xf32>
    %36 = arith.cmpf ogt, %29, %35 : vector<128x36xf32>
    %37 = arith.andi %34, %36 : vector<128x36xi1>
    %cst_26 = arith.constant 2.000000e+00 : f32
    %38 = vector.broadcast %cst_26 : f32 to vector<128x36xf32>
    %39 = arith.mulf %29, %38 : vector<128x36xf32>
    %cst_27 = arith.constant 0.000000e+00 : f32
    %40 = vector.broadcast %cst_27 : f32 to vector<128x36xf32>
    %41 = arith.select %37, %39, %40 : vector<128x36xi1>, vector<128x36xf32>
    %c0_28 = arith.constant 0 : index
    %c0_29 = arith.constant 0 : index
    %42 = vector.load %arg10[%c0_28, %c0_29] : memref<2x36xf32, #tpu.memory_space<vmem>>, vector<2x36xf32>
    %cst_30 = arith.constant dense<0.000000e+00> : vector<2x128xf32>
    %43 = tpu.matmul %42, %41, %cst_30 {dimension_numbers = #tpu.dot_dimension_numbers<[1], [1], [0], [0], [0, 0, 1, 0], [], []>} : vector<2x36xf32>, vector<128x36xf32>, vector<2x128xf32> -> vector<2x128xf32>
    %c0_31 = arith.constant 0 : index
    %c0_32 = arith.constant 0 : index
    %44 = vector.load %arg11[%c0_31, %c0_32] : memref<2x1xf32, #tpu.memory_space<vmem>>, vector<2x1xf32>
    %45 = vector.broadcast %44 : vector<2x1xf32> to vector<2x128xf32>
    %46 = arith.addf %43, %45 : vector<2x128xf32>
    %cst_33 = arith.constant dense<0xFF800000> : vector<128xf32>
    %47 = vector.multi_reduction <maximumf>, %46, %cst_33 [0] : vector<2x128xf32> to vector<128xf32>
    %48 = vector.shape_cast %47 : vector<128xf32> to vector<1x128xf32>
    %49 = vector.broadcast %48 : vector<1x128xf32> to vector<2x128xf32>
    %50 = arith.subf %46, %49 : vector<2x128xf32>
    %51 = math.exp %50 : vector<2x128xf32>
    %cst_34 = arith.constant dense<0.000000e+00> : vector<128xf32>
    %52 = vector.multi_reduction <add>, %51, %cst_34 [0] : vector<2x128xf32> to vector<128xf32>
    %53 = vector.shape_cast %52 : vector<128xf32> to vector<1x128xf32>
    %54 = math.log %53 : vector<1x128xf32>
    %55 = arith.addf %48, %54 : vector<1x128xf32>
    %56 = vector.broadcast %55 : vector<1x128xf32> to vector<2x128xf32>
    %57 = arith.subf %46, %56 : vector<2x128xf32>
    %c0_35 = arith.constant 0 : index
    %c0_36 = arith.constant 0 : index
    %58 = vector.load %arg12[%c0_35, %c0_36] : memref<2x128xf32, #tpu.memory_space<vmem>>, vector<2x128xf32>
    tpu.vector_store %arg12[%c0_35, %c0_36], %57 {strides = array<i32>} : memref<2x128xf32, #tpu.memory_space<vmem>>, vector<2x128xf32>,
    return
  }
  func.func @transform_0(%arg0: i32) -> (i32, i32) {
    %c0_i32 = arith.constant 0 : i32
    %c0_i32_0 = arith.constant 0 : i32
    return %arg0, %c0_i32 : i32, i32
  }
  func.func @transform_1(%arg0: i32) -> (i32, i32) {
    %c0_i32 = arith.constant 0 : i32
    %c0_i32_0 = arith.constant 0 : i32
    return %arg0, %c0_i32 : i32, i32
  }
  func.func @transform_2(%arg0: i32) -> (i32, i32) {
    %c0_i32 = arith.constant 0 : i32
    %c0_i32_0 = arith.constant 0 : i32
    return %arg0, %c0_i32 : i32, i32
  }
  func.func @transform_3(%arg0: i32) -> (i32, i32) {
    %c0_i32 = arith.constant 0 : i32
    %c0_i32_0 = arith.constant 0 : i32
    %c0_i32_1 = arith.constant 0 : i32
    return %c0_i32, %c0_i32_0 : i32, i32
  }
  func.func @transform_4(%arg0: i32) -> (i32, i32) {
    %c0_i32 = arith.constant 0 : i32
    %c0_i32_0 = arith.constant 0 : i32
    %c0_i32_1 = arith.constant 0 : i32
    return %c0_i32, %c0_i32_0 : i32, i32
  }
  func.func @transform_5(%arg0: i32) -> (i32, i32) {
    %c0_i32 = arith.constant 0 : i32
    %c0_i32_0 = arith.constant 0 : i32
    %c0_i32_1 = arith.constant 0 : i32
    return %c0_i32, %c0_i32_0 : i32, i32
  }
  func.func @transform_6(%arg0: i32) -> (i32, i32) {
    %c0_i32 = arith.constant 0 : i32
    %c0_i32_0 = arith.constant 0 : i32
    %c0_i32_1 = arith.constant 0 : i32
    return %c0_i32, %c0_i32_0 : i32, i32
  }
  func.func @transform_7(%arg0: i32) -> (i32, i32) {
    %c0_i32 = arith.constant 0 : i32
    %c0_i32_0 = arith.constant 0 : i32
    %c0_i32_1 = arith.constant 0 : i32
    return %c0_i32, %c0_i32_0 : i32, i32
  }
  func.func @transform_8(%arg0: i32) -> (i32, i32) {
    %c0_i32 = arith.constant 0 : i32
    %c0_i32_0 = arith.constant 0 : i32
    %c0_i32_1 = arith.constant 0 : i32
    return %c0_i32, %c0_i32_0 : i32, i32
  }
  func.func @transform_9(%arg0: i32) -> (i32, i32) {
    %c0_i32 = arith.constant 0 : i32
    %c0_i32_0 = arith.constant 0 : i32
    %c0_i32_1 = arith.constant 0 : i32
    return %c0_i32, %c0_i32_0 : i32, i32
  }
  func.func @transform_10(%arg0: i32) -> (i32, i32) {
    %c0_i32 = arith.constant 0 : i32
    %c0_i32_0 = arith.constant 0 : i32
    %c0_i32_1 = arith.constant 0 : i32
    return %c0_i32, %c0_i32_0 : i32, i32
  }
  func.func @transform_11(%arg0: i32) -> (i32, i32) {
    %c0_i32 = arith.constant 0 : i32
    %c0_i32_0 = arith.constant 0 : i32
    return %c0_i32, %arg0 : i32, i32
  }
}

</mosaic_0001>

<bundles_post_ra>
// kernel: tpu_custom_call.1
= control target key start
LH: loop header
LB: loop body
LE: loop exit
PB: predicated region body
PF: predicated region fallthrough
CT: control target
= control target key end

     0   :  { %16 = vsyncpa [#allocation3], 0  ;;  %s2939_s0 = inlined_call_operand.vmem [shape: bf16[256,267], index: 0, kind: input, shape index: {}]   ;;  %s2940_s1 = inlined_call_operand.vmem [shape: u32[256,36], index: 1, kind: input, shape index: {}]   ;;  %s2941_s2 = inlined_call_operand.vmem [shape: u32[256,36], index: 2, kind: input, shape index: {}]   ;;  %s2942_s3 = inlined_call_operand.vmem [shape: bf16[267,36], index: 3, kind: input, shape index: {}]   ;;  %s2943_s4 = inlined_call_operand.vmem [shape: f32[1,36], index: 4, kind: input, shape index: {}]   ;;  %s2944_s5 = inlined_call_operand.vmem [shape: f32[36,36], index: 5, kind: input, shape index: {}]   ;;  %s2945_s6 = inlined_call_operand.vmem [shape: f32[1,36], index: 6, kind: input, shape index: {}]   ;;  %s2946_s7 = inlined_call_operand.vmem [shape: f32[36,36], index: 7, kind: input, shape index: {}]   ;;  %s2947_s8 = inlined_call_operand.vmem [shape: f32[1,36], index: 8, kind: input, shape index: {}]   ;;  %s2948_s9 = inlined_call_operand.vmem [shape: f32[2,36], index: 9, kind: input, shape index: {}]   ;;  %s2949_s10 = inlined_call_operand.vmem [shape: f32[2,1], index: 10, kind: input, shape index: {}]   ;;  %s2950_s11 = inlined_call_operand.hbm [shape: f32[2,256], index: 11, kind: output, shape index: {}]  }
   0x1   :  { %18 = vsyncpa [#allocation3 + $0x1], 0  ;;  %s2509_s17 = smov 0   ;;  %s2511_s18 = smov 0  }
   0x2   :  { %s2513_s19 = smov 0   ;;  %s2515_s20 = smov 0  }
   0x3 LB: > { %s2530_s21 = sadd.s32 4294967295, %s2441_s20   ;;  %s1861_s22 = sadd.s32 4294967294, %s2441_s20   ;;  %s2441_s20 = sphi %s2515_s20, %s2960_s20   ;;  %s2437_s19 = sphi %s2513_s19, %s2959_s19   ;;  %s2433_s18 = sphi %s2511_s18, %s2958_s18   ;;  %s2429_s17 = sphi %s2509_s17, %s2957_s17  }
   0x4   : > { %s2534_s23 = sadd.s32 1, %s2441_s20   ;;  %s277_s24 = sadd.s32 1, %s2437_s19 }
   0x5   : > { %s274_s25 = ssub.s32 %s2441_s20, %s2534_s23  ;;  %p287_p0 = scmp.ne.s32.totalorder %s2437_s19, %s2433_s18 }
   0x6   : > { %p275_p1 = scmp.eq.s32.totalorder %s274_s25, 0  ;;  %p288_p2 = scmp.eq.s32.totalorder %s2530_s21, 1 }
   0x7   : > { %p293_p3 = scmp.ne.s32.totalorder %s2433_s18, %s2429_s17  ;;  %p294_p4 = scmp.eq.s32.totalorder %s1861_s22, 1 }
   0x8   : > { %s2545_s26 = scalar_select %p275_p1, %s2437_s19, %s277_s24  }
   0x9   : > { %p2547_p5 = por %p288_p2, %p287_p0  ;;  %p2551_p6 = por %p294_p4, %p293_p3 }
   0xa   : > { %2951 = sst [smem:[#allocation5_spill]] %s2545_s26  ;;  %p1864_p7 = scmp.ge.s32.totalorder %s2441_s20, 1 }
   0xb   : > { %p364_p8 = scmp.lt.s32.totalorder %s2441_s20, 3 }
   0xd   : > { %p365_p9 = pnand %p1864_p7, %p364_p8 }
   0xe   : > { %v2326_v0 = vld [vmem:[%s2942_s3 + $0x40] sm:$0xff] (!%p365_p9)   ;;  %v2328_v2 = vld [vmem:[%s2942_s3 + $0x48] sm:$0xff] (!%p365_p9)   ;;  %v2330_v4 = vld [vmem:[%s2942_s3 + $0x50] sm:$0xff] (!%p365_p9)   ;;  %s1866_s29 = sshll.u32 (!%p365_p9), %s2530_s21, 4  ;;  %vm754_vm0 = vcmask (!%p365_p9), 1044480   ;;  %vm755_vm1 = vcmask (!%p365_p9), 1045504  }
   0xf   : > { %368 = sbr.rel (%p365_p9) target bundleno = 1058 (0x422), region = 64  ;;  %v2327_v1 = vld [vmem:[%s2942_s3] sm:$0xff] (!%p365_p9)   ;;  %1979 = vmatprep.subr.bf16.mxu0 (!%p365_p9), %v2326_v0  ;;  %v2329_v3 = vld [vmem:[%s2942_s3 + $0x8] sm:$0xff] (!%p365_p9)   ;;  %p416_p10 = scmp.lt.s32.totalorder (!%p365_p9), %s1866_s29, 31  ;;  %v2331_v5 = vld [vmem:[%s2942_s3 + $0x10] sm:$0xff] (!%p365_p9)   ;;  %v2443_v9 = vmov (!%p365_p9), 65535  }
  0x10   : > { %1980 = vmatpush3.bf16.msra.mxu0 (!%p365_p9), %v2327_v1  ;;  %v2332_v6 = vld [vmem:[%s2942_s3 + $0x58] sm:$0xff] (!%p365_p9)   ;;  %v2334_v8 = vld [vmem:[%s2942_s3 + $0x60] sm:$0xff] (!%p365_p9)   ;;  %v756_v10 = vsel (!%p365_p9), %vm754_vm0, 4294967295, %v2443_v9  ;;  %v2336_v12 = vld [vmem:[%s2942_s3 + $0x68] sm:$0xff] (!%p365_p9)   ;;  %vm729_vm2 = vcmask (!%p365_p9), 89088   ;;  %vm1032_vm3 = vcmask (!%p365_p9), 1043456  }
  0x11   : > { %1981 = vmatprep.subr.bf16.mxu0 (!%p365_p9), %v2328_v2  ;;  %v2333_v7 = vld [vmem:[%s2942_s3 + $0x18] sm:$0xff] (!%p365_p9)   ;;  %v2335_v11 = vld [vmem:[%s2942_s3 + $0x20] sm:$0xff] (!%p365_p9)   ;;  %v757_v13 = vsel (!%p365_p9), %vm755_vm1, %v756_v10, 0  ;;  %v2337_v15 = vld [vmem:[%s2942_s3 + $0x28] sm:$0xff] (!%p365_p9)   ;;  %vm983_vm4 = vcmask (!%p365_p9), 293888   ;;  %s412_s24 = sand.u32 (!%p365_p9), 1, %s2433_s18  }
  0x12   : > { %v2342_v14 = vld [vmem:[%s2942_s3 + $0x80] sm:$0x3f] (!%p365_p9)   ;;  %v2338_v16 = vld [vmem:[%s2942_s3 + $0x70] sm:$0xff] (!%p365_p9)   ;;  %v2340_v23 = vld [vmem:[%s2942_s3 + $0x78] sm:$0xff] (!%p365_p9)   ;;  %s1865_s25 = sshll.u32 (!%p365_p9), %s412_s24, 1  ;;  %s1976_s30 = sshll.u32 (!%p365_p9), %s2530_s21, 5 }
  0x13   : > { %v759_v17 = vand.u32 (!%p365_p9), %v2342_v14, %v757_v13  ;;  %v2339_v21 = vld [vmem:[%s2942_s3 + $0x30] sm:$0xff] (!%p365_p9)   ;;  %v2341_v24 = vld [vmem:[%s2942_s3 + $0x38] sm:$0xff] (!%p365_p9)   ;;  %v971_v30 = vld [vmem:[%s2944_s5] sm:$0xff] (!%p365_p9)  ;;  %s414_s12 = scalar_lea.vmem (!%p365_p9), [#allocation2], %s1865_s25  ;;  %s2448_s21 = smov (!%p365_p9), [#allocation2]  }
  0x14   : > { %1982 = vmatpush3.bf16.msra.mxu0 (!%p365_p9), %v2329_v3  ;;  %v972_v31 = vld [vmem:[%s2944_s5 + $0x8] sm:$0xff] (!%p365_p9)  ;;  %v973_v32 = vld [vmem:[%s2944_s5 + $0x10] sm:$0xff] (!%p365_p9)  ;;  %v974_v33 = vld [vmem:[%s2944_s5 + $0x18] sm:$0xff] (!%p365_p9)  ;;  %s1778_s13 = sshll.u32 (!%p365_p9), %s414_s12, 4  ;;  %s2899_s13 = int_to_ptr.vmem [resolvable:$true] %s1778_s13 }
  0x15   : > { %1983 = vmatprep.subr.bf16.mxu0 (!%p365_p9), %v2330_v4  ;;  %2111 = vmatprep.subr.bf16.mxu1 (!%p365_p9), %v759_v17  ;;  %v2232_v35 = vpack.c.bf16 (!%p365_p9), %v972_v31, %v971_v30  ;;  %v2236_v37 = vpack.c.bf16 (!%p365_p9), %v974_v33, %v973_v32  ;;  %v975_v51 = vld [vmem:[%s2944_s5 + $0x20] sm:$0xf] (!%p365_p9)  ;;  %v1294_v53 = vld [vmem:[%s2946_s7 + $0x8] sm:$0xff] (!%p365_p9) }
  0x16   : > { %s2962_s29 = smov (!%p416_p10, %s1866_s29), 31  ;;  %2112 = vmatpush3.bf16.msra.mxu1 %v759_v17  ;;  %v1293_v52 = vld [vmem:[%s2946_s7] sm:$0xff] }
  0x17   : > { %s2280_s22 = smul.u32 12, %s2962_s29  ;;  %2233 = vmatprep.subr.bf16.mxu1 %v2232_v35  ;;  %v2240_v54 = vpack.c.bf16 %v1294_v53, %v1293_v52  ;;  %v2679_v0 = vld [vmem:[%s2943_s4] ss:$0 sm:$0xff] }
  0x18   : > { %1984 = vmatpush3.bf16.msra.mxu0 %v2331_v5  ;;  %v1297_v30 = vld [vmem:[%s2946_s7 + $0x20] sm:$0xf] }
  0x19   : > { %1985 = vmatprep.subr.bf16.mxu0 %v2332_v6  ;;  %s2597_s26 = scalar_lea.vmem %s2939_s0, %s2280_s22  ;;  %s1869_s22 = sshll.u32 %s2962_s29, 3 }
  0x1a   : > { %v2345_v18 = vld [vmem:[%s2597_s26 + $0x4] ss:$12 sps:$4 sm:$0xff]   ;;  %v2346_v19 = vld [vmem:[%s2597_s26 + $0x8] ss:$12 sps:$4 sm:$0xff]   ;;  %v2347_v20 = vld [vmem:[%s2597_s26 + $0x20] ss:$12 sps:$4 sm:$0xff]   ;;  %s2756_s16 = scalar_lea.vmem %s2940_s1, %s1869_s22  ;;  %s2820_s15 = scalar_lea.vmem %s2941_s2, %s1869_s22 }
  0x1b   : > { %793 = vmatprep.mubr.bf16.mxu0 %v2345_v18  ;;  %2113 = vmatprep.mubr.msk.bf16.mxu1 %vm729_vm2, %v2346_v19  ;;  %v2354_v22 = vld [vmem:[%s2597_s26 + $0x38] ss:$12 sps:$4 sm:$0xff]   ;;  %v2355_v25 = vld [vmem:[%s2597_s26 + $0x50] ss:$12 sps:$4 sm:$0xff]   ;;  %v2362_v26 = vld [vmem:[%s2597_s26 + $0x68] ss:$12 sps:$4 sm:$0xff]  }
  0x1c   : > { %1986 = vmatpush3.bf16.msra.mxu0 %v2333_v7  ;;  %2114 = vmatmul.mubr.msk.bf16.vlgmr.msra.gmra.mrb[0].mxu1 %vm729_vm2, %v2347_v20  ;;  %v2343_v27 = vld [vmem:[%s2597_s26] ss:$12 sps:$4 sm:$0xff]   ;;  %v2348_v28 = vld [vmem:[%s2597_s26 + $0x1c] ss:$12 sps:$4 sm:$0xff]   ;;  %v2370_v34 = vld [vmem:[%s2597_s26 + $0x98] ss:$12 sps:$4 sm:$0xff]  }
  0x1d   : > { %1987 = vmatprep.subr.bf16.mxu0 %v2334_v8  ;;  %2117 = vmatprep.mubr.msk.bf16.mxu1 %vm729_vm2, %v2354_v22  ;;  %v2363_v29 = vld [vmem:[%s2597_s26 + $0x80] ss:$12 sps:$4 sm:$0xff]   ;;  %v2350_v36 = vld [vmem:[%s2597_s26 + $0x18] ss:$12 sps:$4 sm:$0xff]   ;;  %v2371_v39 = vld [vmem:[%s2597_s26 + $0xb0] ss:$12 sps:$4 sm:$0xff]  }
  0x1e   : > { %v2351_v38 = vld [vmem:[%s2597_s26 + $0x34] ss:$12 sps:$4 sm:$0xff]   ;;  %2235 = vmatpush3.bf16.msra.mxu1 %v2232_v35  ;;  %v2353_v40 = vld [vmem:[%s2597_s26 + $0x30] ss:$12 sps:$4 sm:$0xff]   ;;  %v2356_v41 = vld [vmem:[%s2597_s26 + $0x4c] ss:$12 sps:$4 sm:$0xff]  }
  0x1f   : > { %2237 = vmatprep.subr.bf16.mxu1 %v2236_v37  ;;  %v2358_v42 = vld [vmem:[%s2597_s26 + $0x48] ss:$12 sps:$4 sm:$0xff]   ;;  %v2359_v43 = vld [vmem:[%s2597_s26 + $0x64] ss:$12 sps:$4 sm:$0xff]   ;;  %v2361_v44 = vld [vmem:[%s2597_s26 + $0x60] ss:$12 sps:$4 sm:$0xff]  }
  0x20   : > { %1988 = vmatpush3.bf16.msra.mxu0 %v2335_v11  ;;  %v2364_v45 = vld [vmem:[%s2597_s26 + $0x7c] ss:$12 sps:$4 sm:$0xff]   ;;  %v2366_v46 = vld [vmem:[%s2597_s26 + $0x78] ss:$12 sps:$4 sm:$0xff]   ;;  %v2367_v47 = vld [vmem:[%s2597_s26 + $0x94] ss:$12 sps:$4 sm:$0xff]  }
  0x21   : > { %1989 = vmatprep.subr.bf16.mxu0 %v2336_v12  ;;  %v2369_v48 = vld [vmem:[%s2597_s26 + $0x90] ss:$12 sps:$4 sm:$0xff]   ;;  %v2372_v49 = vld [vmem:[%s2597_s26 + $0xac] ss:$12 sps:$4 sm:$0xff]   ;;  %v2374_v50 = vld [vmem:[%s2597_s26 + $0xa8] ss:$12 sps:$4 sm:$0xff]   ;;  %s2897_s26 = scalar_lea.hbm %s2950_s11, %s1976_s30 }
  0x22   : > { %2239 = vmatpush3.bf16.msra.mxu1 %v2236_v37  ;;  %v1295_v11 = vld [vmem:[%s2946_s7 + $0x10] sm:$0xff]  ;;  %v1296_v12 = vld [vmem:[%s2946_s7 + $0x18] sm:$0xff]  ;;  %s2379_s29 = scalar_lea.vmem %s2899_s13, 32  ;;  %s2383_s22 = sshll.u32 %s2448_s21, 4  ;;  %s2384_s22 = int_to_ptr.vmem [resolvable:$false] %s2383_s22 }
  0x23   : > { %2137 = vmatprep.subr.msk.mxu1 %vm1032_vm3, %v975_v51  ;;  %v2244_v22 = vpack.c.bf16 %v1296_v12, %v1295_v11  ;;  %p2380_p11 = scmp.ne.s32.totalorder %s2899_s13, %s2379_s29  ;;  %s2385_s25 = scalar_lea.vmem %s2384_s22, 64 }
  0x24   : > { %1990 = vmatpush3.bf16.msra.mxu0 %v2337_v15  ;;  %2118 = vmatmul.mubr.msk.bf16.gmra.mrb[4].mxu1 %vm729_vm2, %v2355_v25  ;;  %p2386_p0 = scmp.lt.s32.totalorder %s2899_s13, %s2384_s22  ;;  %p2387_p1 = scmp.lt.s32.totalorder %s2385_s25, %s2379_s29 }
  0x25   : > { %1991 = vmatprep.subr.bf16.mxu0 %v2338_v16  ;;  %2121 = vmatprep.mubr.msk.bf16.mxu1 %vm729_vm2, %v2362_v26  ;;  %p2381_p12 = pnand %p2380_p11, %p2547_p5 }
  0x26   : > { %2138 = vmatpush3.msk.msra.mxu1 %vm1032_vm3, %v975_v51  ;;  %p2388_p2 = por %p2387_p1, %p2386_p0 }
  0x27   : > { %2241 = vmatprep.subr.bf16.mxu1 %v2240_v54  ;;  %p2382_p13 = pneg %p2381_p12 }
  0x28   : > { %1992 = vmatpush3.bf16.msra.mxu0 %v2339_v21 }
  0x29   : > { %1993 = vmatprep.subr.bf16.mxu0 %v2340_v23  ;;  %p2389_p3 = pnand %p2388_p2, %p2382_p13 }
  0x2c   : > { %1994 = vmatpush3.bf16.msra.mxu0 %v2341_v24  ;;  %2122 = vmatmul.mubr.msk.bf16.gmra.mrb[8].mxu1 %vm729_vm2, %v2363_v29 }
  0x2d   : > { %2125 = vmatprep.mubr.msk.bf16.mxu1 %vm729_vm2, %v2370_v34 }
  0x2f   : > { %794 = vmatmul.mubr.bf16.vlgmr.msra.gmra.mrb[0].mxu0 %v2343_v27 }
  0x30   : > { %801 = vmatprep.mubr.bf16.mxu0 %v2348_v28 }
  0x34   : > { %2126 = vmatmul.mubr.msk.bf16.gmra.mrb[12].mxu1 %vm729_vm2, %v2371_v39 }
  0x37   : > { %802 = vmatmul.mubr.bf16.gmra.mrb[4].mxu0 %v2350_v36 }
  0x38   : > { %809 = vmatprep.mubr.bf16.mxu0 %v2351_v38 }
  0x3f   : > { %810 = vmatmul.mubr.bf16.gmra.mrb[8].mxu0 %v2353_v40 }
  0x40   : > { %817 = vmatprep.mubr.bf16.mxu0 %v2356_v41 }
  0x47   : > { %818 = vmatmul.mubr.bf16.gmra.mrb[12].mxu0 %v2358_v42 }
  0x48   : > { %825 = vmatprep.mubr.bf16.mxu0 %v2359_v43 }
  0x4f   : > { %826 = vmatmul.mubr.bf16.gmra.mrb[16].mxu0 %v2361_v44 }
  0x50   : > { %833 = vmatprep.mubr.bf16.mxu0 %v2364_v45 }
  0x57   : > { %834 = vmatmul.mubr.bf16.gmra.mrb[20].mxu0 %v2366_v46 }
  0x58   : > { %841 = vmatprep.mubr.bf16.mxu0 %v2367_v47 }
  0x5f   : > { %842 = vmatmul.mubr.bf16.gmra.mrb[24].mxu0 %v2369_v48 }
  0x60   : > { %849 = vmatprep.mubr.bf16.mxu0 %v2372_v49 }
  0x67   : > { %850 = vmatmul.mubr.bf16.gmra.mrb[28].mxu0 %v2374_v50 }
  0xef   : > { %v2115_v55 = vpop.f32.mrb[0].mxu1 }
  0xf0   : > { %v892_v56 = vpop.f32.mrb[1].mxu1 }
  0xf1   : > { %v2116_v57 = vpop.f32.mrb[2].mxu1 }
  0xf2   : > { %v895_v58 = vpop.f32.mrb[3].mxu1 }
  0xf7   : > { %v2672_v59 = vpop.f32.mrb[4].mxu1 }
  0xf8   : > { %v908_v60 = vpop.f32.mrb[5].mxu1 }
  0xf9   : > { %v2674_v62 = vpop.f32.mrb[6].mxu1 }
  0xfa   : > { %v911_v1 = vpop.f32.mrb[7].mxu1 }
  0xff   : > { %v2683_v9 = vpop.f32.mrb[8].mxu1 }
 0x100   : > { %v2685_v10 = vpop.f32.mrb[9].mxu1 }
 0x101   : > { %v2693_v16 = vpop.f32.mrb[10].mxu1 }
 0x102   : > { %v1995_v61 = vpop.f32.mrb[0].mxu0  ;;  %v2695_v18 = vpop.f32.mrb[11].mxu1 }
 0x103   : > { %v1996_v63 = vpop.f32.mrb[1].mxu0 }
 0x104   : > { %v1997_v2 = vadd.f32 %v1996_v63, %v1995_v61  ;;  %v1998_v3 = vpop.f32.mrb[2].mxu0 }
 0x105   : > { %v1999_v4 = vpop.f32.mrb[3].mxu0 }
 0x106   : > { %v796_v5 = vadd.f32 %v1997_v2, %v2679_v0  ;;  %v2000_v6 = vadd.f32 %v1999_v4, %v1998_v3 }
 0x107   : > { %v2701_v28 = vpop.f32.mrb[12].mxu1 }
 0x108   : > { %v893_v7 = vadd.f32 %v892_v56, %v796_v5  ;;  %v799_v8 = vadd.f32 %v2000_v6, %v2679_v0  ;;  %v2703_v29 = vpop.f32.mrb[13].mxu1 }
 0x109   : > { %v2708_v34 = vpop.f32.mrb[14].mxu1 }
 0x10a   : > { %v955_v13 = vmax.f32 %v893_v7, 0.0  ;;  %v896_v14 = vadd.f32 %v895_v58, %v799_v8  ;;  %v2001_v15 = vpop.f32.mrb[4].mxu0  ;;  %v2710_v36 = vpop.f32.mrb[15].mxu1 }
 0x10b   : > { %v2002_v17 = vpop.f32.mrb[5].mxu0 }
 0x10c   : > { %v956_v19 = vmax.f32 %v896_v14, 0.0  ;;  %v2003_v20 = vadd.f32 %v2002_v17, %v2001_v15  ;;  %v2004_v21 = vpop.f32.mrb[6].mxu0  ;;  %2139 = vmatprep.mubr.msk.f32.mxu1 %vm983_vm4, %v955_v13 }
 0x10d   : > { %v2005_v23 = vpop.f32.mrb[7].mxu0 }
 0x10e   : > { %v804_v24 = vadd.f32 %v2003_v20, %v2679_v0  ;;  %v2006_v25 = vadd.f32 %v2005_v23, %v2004_v21  ;;  %2140 = vmatmul.mubr.msk.f32.vlgmr.msra.gmra.mrb[16].mxu1 %vm983_vm4, %v956_v19 }
 0x10f   : > { %2243 = vmatpush3.bf16.msra.mxu1 %v2240_v54 }
 0x110   : > { %v901_v26 = vadd.f32 %v2115_v55, %v804_v24  ;;  %v807_v27 = vadd.f32 %v2006_v25, %v2679_v0  ;;  %2245 = vmatprep.subr.bf16.mxu1 %v2244_v22 }
 0x112   : > { %v957_v31 = vmax.f32 %v901_v26, 0.0  ;;  %v904_v32 = vadd.f32 %v2116_v57, %v807_v27  ;;  %v2007_v33 = vpop.f32.mrb[8].mxu0 }
 0x113   : > { %v2008_v35 = vpop.f32.mrb[9].mxu0  ;;  %2247 = vmatpush3.bf16.msra.mxu1 %v2244_v22 }
 0x114   : > { %v958_v37 = vmax.f32 %v904_v32, 0.0  ;;  %v2009_v38 = vadd.f32 %v2008_v35, %v2007_v33  ;;  %v2010_v39 = vpop.f32.mrb[10].mxu0  ;;  %2142 = vmatprep.mubr.msk.f32.mxu1 %vm983_vm4, %v957_v31  ;;  %2171 = vmatprep.subr.msk.mxu1 %vm1032_vm3, %v1297_v30 }
 0x115   : > { %v2011_v40 = vpop.f32.mrb[11].mxu0 }
 0x116   : > { %v812_v41 = vadd.f32 %v2009_v38, %v2679_v0  ;;  %v2012_v42 = vadd.f32 %v2011_v40, %v2010_v39  ;;  %2143 = vmatmul.mubr.msk.f32.gmra.mrb[18].mxu1 %vm983_vm4, %v958_v37 }
 0x117   : > { %2172 = vmatpush3.msk.msra.mxu1 %vm1032_vm3, %v1297_v30 }
 0x118   : > { %v909_v43 = vadd.f32 %v908_v60, %v812_v41  ;;  %v815_v44 = vadd.f32 %v2012_v42, %v2679_v0 }
 0x11a   : > { %v959_v45 = vmax.f32 %v909_v43, 0.0  ;;  %v912_v46 = vadd.f32 %v911_v1, %v815_v44  ;;  %v2013_v47 = vpop.f32.mrb[12].mxu0 }
 0x11b   : > { %v2014_v48 = vpop.f32.mrb[13].mxu0 }
 0x11c   : > { %v960_v49 = vmax.f32 %v912_v46, 0.0  ;;  %v2015_v50 = vadd.f32 %v2014_v48, %v2013_v47  ;;  %v2016_v51 = vpop.f32.mrb[14].mxu0  ;;  %2145 = vmatprep.mubr.msk.f32.mxu1 %vm983_vm4, %v959_v45 }
 0x11d   : > { %v2017_v52 = vpop.f32.mrb[15].mxu0 }
 0x11e   : > { %v820_v53 = vadd.f32 %v2015_v50, %v2679_v0  ;;  %v2018_v54 = vadd.f32 %v2017_v52, %v2016_v51  ;;  %2146 = vmatmul.mubr.msk.f32.gmra.mrb[20].mxu1 %vm983_vm4, %v960_v49 }
 0x120   : > { %v917_v55 = vadd.f32 %v2672_v59, %v820_v53  ;;  %v823_v56 = vadd.f32 %v2018_v54, %v2679_v0  ;;  %v1184_v53 = vld [vmem:[%s2756_s16 + $0x18] sm:$0xff] }
 0x122   : > { %v961_v57 = vmax.f32 %v917_v55, 0.0  ;;  %v920_v58 = vadd.f32 %v2674_v62, %v823_v56  ;;  %v2019_v60 = vpop.f32.mrb[16].mxu0  ;;  %v1183_v55 = vld [vmem:[%s2756_s16 + $0x10] sm:$0xff] }
 0x123   : > { %v2020_v61 = vpop.f32.mrb[17].mxu0 }
 0x124   : > { %v962_v63 = vmax.f32 %v920_v58, 0.0  ;;  %v2021_v1 = vadd.f32 %v2020_v61, %v2019_v60  ;;  %v2022_v2 = vpop.f32.mrb[18].mxu0  ;;  %2148 = vmatprep.mubr.msk.f32.mxu1 %vm983_vm4, %v961_v57  ;;  %v1200_v57 = vshrl.u32 %v1184_v53, 31  ;;  %v1199_v60 = vshrl.u32 %v1183_v55, 31 }
 0x125   : > { %v2023_v3 = vpop.f32.mrb[19].mxu0 }
 0x126   : > { %v828_v4 = vadd.f32 %v2021_v1, %v2679_v0  ;;  %v2024_v5 = vadd.f32 %v2023_v3, %v2022_v2  ;;  %2149 = vmatmul.mubr.msk.f32.gmra.mrb[22].mxu1 %vm983_vm4, %v962_v63  ;;  %vm1216_vm11 = vcmp.eq.s32.totalorder %v1200_v57, 0  ;;  %vm1215_vm12 = vcmp.eq.s32.totalorder %v1199_v60, 0 }
 0x128   : > { %v925_v59 = vadd.f32 %v2685_v10, %v828_v4  ;;  %v831_v6 = vadd.f32 %v2024_v5, %v2679_v0  ;;  %v1186_v4 = vld [vmem:[%s2756_s16 + $0x28] sm:$0xff] }
 0x12a   : > { %v963_v7 = vmax.f32 %v925_v59, 0.0  ;;  %v928_v62 = vadd.f32 %v2695_v18, %v831_v6  ;;  %v2025_v8 = vpop.f32.mrb[20].mxu0  ;;  %v1185_v59 = vld [vmem:[%s2756_s16 + $0x20] sm:$0xff] }
 0x12b   : > { %v2026_v11 = vpop.f32.mrb[21].mxu0 }
 0x12c   : > { %v964_v12 = vmax.f32 %v928_v62, 0.0  ;;  %v2027_v13 = vadd.f32 %v2026_v11, %v2025_v8  ;;  %v2028_v14 = vpop.f32.mrb[22].mxu0  ;;  %2151 = vmatprep.mubr.msk.f32.mxu1 %vm983_vm4, %v963_v7  ;;  %v1202_v7 = vshrl.u32 %v1186_v4, 31  ;;  %v1201_v8 = vshrl.u32 %v1185_v59, 31 }
 0x12d   : > { %v2029_v15 = vpop.f32.mrb[23].mxu0 }
 0x12e   : > { %v836_v17 = vadd.f32 %v2027_v13, %v2679_v0  ;;  %v2030_v19 = vadd.f32 %v2029_v15, %v2028_v14  ;;  %2152 = vmatmul.mubr.msk.f32.gmra.mrb[24].mxu1 %vm983_vm4, %v964_v12  ;;  %vm1218_vm1 = vcmp.eq.s32.totalorder %v1202_v7, 0  ;;  %vm1217_vm2 = vcmp.eq.s32.totalorder %v1201_v8, 0 }
 0x130   : > { %v933_v10 = vadd.f32 %v2683_v9, %v836_v17  ;;  %v839_v20 = vadd.f32 %v2030_v19, %v2679_v0  ;;  %v1188_v17 = vld [vmem:[%s2756_s16 + $0x38] sm:$0xff] }
 0x132   : > { %v965_v21 = vmax.f32 %v933_v10, 0.0  ;;  %v936_v18 = vadd.f32 %v2693_v16, %v839_v20  ;;  %v2031_v22 = vpop.f32.mrb[24].mxu0  ;;  %v1187_v10 = vld [vmem:[%s2756_s16 + $0x30] sm:$0xff] }
 0x133   : > { %v2032_v23 = vpop.f32.mrb[25].mxu0 }
 0x134   : > { %v966_v24 = vmax.f32 %v936_v18, 0.0  ;;  %v2033_v25 = vadd.f32 %v2032_v23, %v2031_v22  ;;  %v2034_v26 = vpop.f32.mrb[26].mxu0  ;;  %2154 = vmatprep.mubr.msk.f32.mxu1 %vm983_vm4, %v965_v21  ;;  %v1204_v21 = vshrl.u32 %v1188_v17, 31  ;;  %v1203_v22 = vshrl.u32 %v1187_v10, 31 }
 0x135   : > { %v2035_v27 = vpop.f32.mrb[27].mxu0  ;;  %v2446_v10 = vmov 0.0  }
 0x136   : > { %v844_v30 = vadd.f32 %v2033_v25, %v2679_v0  ;;  %v2036_v31 = vadd.f32 %v2035_v27, %v2034_v26  ;;  %2155 = vmatmul.mubr.msk.f32.gmra.mrb[26].mxu1 %vm983_vm4, %v966_v24 }
 0x138   : > { %v941_v9 = vadd.f32 %v2703_v29, %v844_v30  ;;  %v847_v32 = vadd.f32 %v2036_v31, %v2679_v0  ;;  %v1190_v30 = vld [vmem:[%s2756_s16 + $0x48] sm:$0xff] }
 0x13a   : > { %v967_v33 = vmax.f32 %v941_v9, 0.0  ;;  %v944_v16 = vadd.f32 %v2710_v36, %v847_v32  ;;  %v2037_v35 = vpop.f32.mrb[28].mxu0  ;;  %v1189_v9 = vld [vmem:[%s2756_s16 + $0x40] sm:$0xff] }
 0x13b   : > { %v2038_v37 = vpop.f32.mrb[29].mxu0 }
 0x13c   : > { %v968_v38 = vmax.f32 %v944_v16, 0.0  ;;  %v2039_v39 = vadd.f32 %v2038_v37, %v2037_v35  ;;  %v2040_v40 = vpop.f32.mrb[30].mxu0  ;;  %2157 = vmatprep.mubr.msk.f32.mxu1 %vm983_vm4, %v967_v33  ;;  %v1206_v33 = vshrl.u32 %v1190_v30, 31  ;;  %v1205_v35 = vshrl.u32 %v1189_v9, 31 }
 0x13d   : > { %v2041_v41 = vpop.f32.mrb[31].mxu0 }
 0x13e   : > { %v852_v42 = vadd.f32 %v2039_v39, %v2679_v0  ;;  %v2042_v43 = vadd.f32 %v2041_v41, %v2040_v40  ;;  %2158 = vmatmul.mubr.msk.f32.gmra.mrb[28].mxu1 %vm983_vm4, %v968_v38 }
 0x140   : > { %v949_v29 = vadd.f32 %v2701_v28, %v852_v42  ;;  %v855_v44 = vadd.f32 %v2042_v43, %v2679_v0  ;;  %v1182_v0 = vld [vmem:[%s2756_s16 + $0x8] sm:$0xff]  ;;  %v1181_v28 = vld [vmem:[%s2756_s16] sm:$0xff]  ;;  %v1192_v42 = vld [vmem:[%s2756_s16 + $0x58] sm:$0xff] }
 0x141   : > { %v1198_v47 = vshrl.u32 %v1182_v0, 31  ;;  %v1197_v48 = vshrl.u32 %v1181_v28, 31 }
 0x142   : > { %v969_v36 = vmax.f32 %v949_v29, 0.0  ;;  %v952_v45 = vadd.f32 %v2708_v34, %v855_v44  ;;  %v2763_v34 = vld [vmem:[%s2945_s6] ss:$0 sm:$0xff]  ;;  %v1191_v29 = vld [vmem:[%s2756_s16 + $0x50] sm:$0xff] }
 0x143   : > { %vm1214_vm5 = vcmp.eq.s32.totalorder %v1198_v47, 0  ;;  %vm1213_vm6 = vcmp.eq.s32.totalorder %v1197_v48, 0 }
 0x144   : > { %v970_v46 = vmax.f32 %v952_v45, 0.0  ;;  %2160 = vmatprep.mubr.msk.f32.mxu1 %vm983_vm4, %v969_v36  ;;  %v1208_v36 = vshrl.u32 %v1192_v42, 31 }
 0x146   : > { %2161 = vmatmul.mubr.msk.f32.gmra.mrb[30].mxu1 %vm983_vm4, %v970_v46  ;;  %v1207_v46 = vshrl.u32 %v1191_v29, 31 }
 0x1e1   : > { %v2141_v49 = vpop.f32.mrb[16].mxu1 }
 0x1e2   : > { %v1108_v50 = vadd.f32 %v2141_v49, %v2763_v34  ;;  %v1102_v51 = vpop.f32.mrb[17].mxu1 }
 0x1e3   : > { %v1103_v52 = vadd.f32 %v2763_v34, %v1102_v51 }
 0x1e4   : > { %vm1230_vm7 = vcmp.gt.f32.partialorder %v1108_v50, 0.0  ;;  %v1262_v54 = vmul.f32 2.0, %v1108_v50  ;;  %v1194_v50 = vld [vmem:[%s2756_s16 + $0x68] sm:$0xff] }
 0x1e5   : > { %vm1246_vm8 = vmand %vm1214_vm5, %vm1230_vm7  ;;  %vm1229_vm9 = vcmp.gt.f32.partialorder %v1103_v52, 0.0  ;;  %v1261_v56 = vmul.f32 2.0, %v1103_v52  ;;  %v1193_v52 = vld [vmem:[%s2756_s16 + $0x60] sm:$0xff] }
 0x1e6   : > { %vm1245_vm10 = vmand %vm1213_vm6, %vm1229_vm9  ;;  %v1278_v61 = vsel %vm1246_vm8, %v1262_v54, 0.0  ;;  %vm1220_vm8 = vcmp.eq.s32.totalorder %v1204_v21, 0  ;;  %vm1219_vm9 = vcmp.eq.s32.totalorder %v1203_v22, 0  ;;  %v1210_v54 = vshrl.u32 %v1194_v50, 31  ;;  %v1502_v21 = vld [vmem:[%s2820_s15 + $0x8] sm:$0xff] }
 0x1e7   : > { %v1277_v58 = vsel %vm1245_vm10, %v1261_v56, 0.0  ;;  %v1209_v56 = vshrl.u32 %v1193_v52, 31  ;;  %v1518_v22 = vshrl.u32 %v1502_v21, 31 }
 0x1e8   : > { %2173 = vmatprep.mubr.msk.f32.mxu1 %vm983_vm4, %v1277_v58 }
 0x1e9   : > { %v2144_v63 = vpop.f32.mrb[18].mxu1  ;;  %2174 = vmatmul.mubr.msk.f32.vlgmr.msra.gmra.mrb[32].mxu1 %vm983_vm4, %v1278_v61 }
 0x1ea   : > { %v1118_v1 = vadd.f32 %v2144_v63, %v2763_v34  ;;  %v1112_v2 = vpop.f32.mrb[19].mxu1 }
 0x1eb   : > { %v1113_v3 = vadd.f32 %v2763_v34, %v1112_v2 }
 0x1ec   : > { %vm1232_vm13 = vcmp.gt.f32.partialorder %v1118_v1, 0.0  ;;  %v1264_v5 = vmul.f32 2.0, %v1118_v1  ;;  %v1196_v1 = vld [vmem:[%s2756_s16 + $0x78] sm:$0xff] }
 0x1ed   : > { %vm1248_vm14 = vmand %vm1216_vm11, %vm1232_vm13  ;;  %vm1231_vm15 = vcmp.gt.f32.partialorder %v1113_v3, 0.0  ;;  %v1263_v6 = vmul.f32 2.0, %v1113_v3  ;;  %v1195_v3 = vld [vmem:[%s2756_s16 + $0x70] sm:$0xff]  ;;  %s1765_s16 = scalar_lea.sflag [#allocation3], %s412_s24 }
 0x1ee   : > { %vm1247_vm0 = vmand %vm1215_vm12, %vm1231_vm15  ;;  %v1280_v11 = vsel %vm1248_vm14, %v1264_v5, 0.0  ;;  %vm1222_vm14 = vcmp.eq.s32.totalorder %v1206_v33, 0  ;;  %vm1221_vm15 = vcmp.eq.s32.totalorder %v1205_v35, 0  ;;  %v1212_v5 = vshrl.u32 %v1196_v1, 31 }
 0x1ef   : > { %v1279_v62 = vsel %vm1247_vm0, %v1263_v6, 0.0  ;;  %v1211_v6 = vshrl.u32 %v1195_v3, 31 }
 0x1f0   : > { %2176 = vmatprep.mubr.msk.f32.mxu1 %vm983_vm4, %v1279_v62 }
 0x1f1   : > { %v2147_v12 = vpop.f32.mrb[20].mxu1  ;;  %2177 = vmatmul.mubr.msk.f32.gmra.mrb[34].mxu1 %vm983_vm4, %v1280_v11 }
 0x1f2   : > { %v1128_v13 = vadd.f32 %v2147_v12, %v2763_v34  ;;  %v1122_v14 = vpop.f32.mrb[21].mxu1 }
 0x1f3   : > { %v1123_v15 = vadd.f32 %v2763_v34, %v1122_v14 }
 0x1f4   : > { %vm1234_vm3 = vcmp.gt.f32.partialorder %v1128_v13, 0.0  ;;  %v1266_v19 = vmul.f32 2.0, %v1128_v13 }
 0x1f5   : > { %vm1250_vm5 = vmand %vm1218_vm1, %vm1234_vm3  ;;  %vm1233_vm6 = vcmp.gt.f32.partialorder %v1123_v15, 0.0  ;;  %v1265_v20 = vmul.f32 2.0, %v1123_v15 }
 0x1f6   : > { %vm1249_vm7 = vmand %vm1217_vm2, %vm1233_vm6  ;;  %v1282_v23 = vsel %vm1250_vm5, %v1266_v19, 0.0  ;;  %vm1224_vm5 = vcmp.eq.s32.totalorder %v1208_v36, 0  ;;  %vm1223_vm6 = vcmp.eq.s32.totalorder %v1207_v46, 0  ;;  %v2444_v19 = vmov 0.0|0.0  }
 0x1f7   : > { %v1281_v18 = vsel %vm1249_vm7, %v1265_v20, 0.0  ;;  %2248 = vmatprep.subr.bf16.mxu0 %v2444_v19  ;;  %v2447_v20 = vmov 0  }
 0x1f8   : > { %2179 = vmatprep.mubr.msk.f32.mxu1 %vm983_vm4, %v1281_v18  ;;  %2325 = vset.pattern.permute.xlu0 %v2447_v20  ;;  %v1501_v18 = vld [vmem:[%s2820_s15] sm:$0xff]  ;;  %v1512_v20 = vld [vmem:[%s2820_s15 + $0x58] sm:$0xff] }
 0x1f9   : > { %v2150_v24 = vpop.f32.mrb[22].mxu1  ;;  %2180 = vmatmul.mubr.msk.f32.gmra.mrb[36].mxu1 %vm983_vm4, %v1282_v23  ;;  %v2827_v23 = vld [vmem:[%s2947_s8] ss:$0 sm:$0xff] }
 0x1fa   : > { %v1138_v25 = vadd.f32 %v2150_v24, %v2763_v34  ;;  %v1132_v26 = vpop.f32.mrb[23].mxu1  ;;  %v1517_v24 = vshrl.u32 %v1501_v18, 31  ;;  %v1511_v18 = vld [vmem:[%s2820_s15 + $0x50] sm:$0xff] }
 0x1fb   : > { %v1133_v27 = vadd.f32 %v2763_v34, %v1132_v26 }
 0x1fc   : > { %vm1236_vm10 = vcmp.gt.f32.partialorder %v1138_v25, 0.0  ;;  %v1268_v31 = vmul.f32 2.0, %v1138_v25 }
 0x1fd   : > { %vm1252_vm11 = vmand %vm1220_vm8, %vm1236_vm10  ;;  %vm1235_vm12 = vcmp.gt.f32.partialorder %v1133_v27, 0.0  ;;  %v1267_v32 = vmul.f32 2.0, %v1133_v27 }
 0x1fe   : > { %vm1251_vm13 = vmand %vm1219_vm9, %vm1235_vm12  ;;  %v1284_v37 = vsel %vm1252_vm11, %v1268_v31, 0.0  ;;  %vm1226_vm11 = vcmp.eq.s32.totalorder %v1210_v54, 0  ;;  %vm1225_vm12 = vcmp.eq.s32.totalorder %v1209_v56, 0  ;;  %v1504_v31 = vld [vmem:[%s2820_s15 + $0x18] sm:$0xff]  ;;  %v1507_v56 = vld [vmem:[%s2820_s15 + $0x30] sm:$0xff] }
 0x1ff   : > { %v1283_v16 = vsel %vm1251_vm13, %v1267_v32, 0.0  ;;  %v1503_v32 = vld [vmem:[%s2820_s15 + $0x10] sm:$0xff]  ;;  %v1520_v35 = vshrl.u32 %v1504_v31, 31  ;;  %v1508_v54 = vld [vmem:[%s2820_s15 + $0x38] sm:$0xff] }
 0x200   : > { %2182 = vmatprep.mubr.msk.f32.mxu1 %vm983_vm4, %v1283_v16 }
 0x201   : > { %v2153_v38 = vpop.f32.mrb[24].mxu1  ;;  %2183 = vmatmul.mubr.msk.f32.gmra.mrb[38].mxu1 %vm983_vm4, %v1284_v37 }
 0x202   : > { %v1148_v39 = vadd.f32 %v2153_v38, %v2763_v34  ;;  %v1142_v40 = vpop.f32.mrb[25].mxu1  ;;  %v1519_v38 = vshrl.u32 %v1503_v32, 31 }
 0x203   : > { %v1143_v41 = vadd.f32 %v2763_v34, %v1142_v40 }
 0x204   : > { %vm1238_vm0 = vcmp.gt.f32.partialorder %v1148_v39, 0.0  ;;  %v1270_v43 = vmul.f32 2.0, %v1148_v39 }
 0x205   : > { %vm1254_vm1 = vmand %vm1222_vm14, %vm1238_vm0  ;;  %vm1237_vm2 = vcmp.gt.f32.partialorder %v1143_v41, 0.0  ;;  %v1269_v44 = vmul.f32 2.0, %v1143_v41 }
 0x206   : > { %vm1253_vm3 = vmand %vm1221_vm15, %vm1237_vm2  ;;  %v1286_v0 = vsel %vm1254_vm1, %v1270_v43, 0.0  ;;  %vm1228_vm1 = vcmp.eq.s32.totalorder %v1212_v5, 0  ;;  %vm1227_vm2 = vcmp.eq.s32.totalorder %v1211_v6, 0 }
 0x207   : > { %v1285_v45 = vsel %vm1253_vm3, %v1269_v44, 0.0  ;;  %v1506_v44 = vld [vmem:[%s2820_s15 + $0x28] sm:$0xff] }
 0x208   : > { %2185 = vmatprep.mubr.msk.f32.mxu1 %vm983_vm4, %v1285_v45  ;;  %v1505_v45 = vld [vmem:[%s2820_s15 + $0x20] sm:$0xff] }
 0x209   : > { %v2156_v28 = vpop.f32.mrb[26].mxu1  ;;  %2186 = vmatmul.mubr.msk.f32.gmra.mrb[40].mxu1 %vm983_vm4, %v1286_v0 }
 0x20a   : > { %v1158_v47 = vadd.f32 %v2156_v28, %v2763_v34  ;;  %v1152_v48 = vpop.f32.mrb[27].mxu1  ;;  %v1522_v28 = vshrl.u32 %v1506_v44, 31 }
 0x20b   : > { %v1153_v49 = vadd.f32 %v2763_v34, %v1152_v48  ;;  %v1521_v48 = vshrl.u32 %v1505_v45, 31 }
 0x20c   : > { %vm1240_vm7 = vcmp.gt.f32.partialorder %v1158_v47, 0.0  ;;  %v1272_v51 = vmul.f32 2.0, %v1158_v47 }
 0x20d   : > { %vm1256_vm8 = vmand %vm1224_vm5, %vm1240_vm7  ;;  %vm1239_vm9 = vcmp.gt.f32.partialorder %v1153_v49, 0.0  ;;  %v1271_v53 = vmul.f32 2.0, %v1153_v49 }
 0x20e   : > { %vm1255_vm10 = vmand %vm1223_vm6, %vm1239_vm9  ;;  %v1288_v57 = vsel %vm1256_vm8, %v1272_v51, 0.0  ;;  %vm2445_vm8 = vmmov 0   ;;  %vm1534_vm9 = vcmp.eq.s32.totalorder %v1518_v22, 0 }
 0x20f   : > { %v1287_v55 = vsel %vm1255_vm10, %v1271_v53, 0.0  ;;  %2229 = vmatprep.mubr.msk.f32.mxu0 %vm2445_vm8, %v2446_v10  ;;  %vm1533_vm10 = vcmp.eq.s32.totalorder %v1517_v24, 0  ;;  %vm1537_vm8 = vcmp.eq.s32.totalorder %v1521_v48, 0 }
 0x210   : > { %2188 = vmatprep.mubr.msk.f32.mxu1 %vm983_vm4, %v1287_v55 }
 0x211   : > { %v2159_v58 = vpop.f32.mrb[28].mxu1  ;;  %2189 = vmatmul.mubr.msk.f32.gmra.mrb[42].mxu1 %vm983_vm4, %v1288_v57 }
 0x212   : > { %v1168_v60 = vadd.f32 %v2159_v58, %v2763_v34  ;;  %v1162_v61 = vpop.f32.mrb[29].mxu1 }
 0x213   : > { %v1163_v63 = vadd.f32 %v2763_v34, %v1162_v61 }
 0x214   : > { %vm1242_vm13 = vcmp.gt.f32.partialorder %v1168_v60, 0.0  ;;  %v1274_v2 = vmul.f32 2.0, %v1168_v60  ;;  %v1524_v60 = vshrl.u32 %v1508_v54, 31 }
 0x215   : > { %vm1258_vm14 = vmand %vm1226_vm11, %vm1242_vm13  ;;  %vm1241_vm15 = vcmp.gt.f32.partialorder %v1163_v63, 0.0  ;;  %v1273_v4 = vmul.f32 2.0, %v1163_v63  ;;  %v1523_v63 = vshrl.u32 %v1507_v56, 31 }
 0x216   : > { %vm1257_vm0 = vmand %vm1225_vm12, %vm1241_vm15  ;;  %v1290_v7 = vsel %vm1258_vm14, %v1274_v2, 0.0 }
 0x217   : > { %v1289_v59 = vsel %vm1257_vm0, %v1273_v4, 0.0  ;;  %vm2835_vm15 = vmpackc.low %vm983_vm4, %vm983_vm4  ;;  %vm1536_vm0 = vcmp.eq.s32.totalorder %v1520_v35, 0 }
 0x218   : > { %2191 = vmatprep.mubr.msk.f32.mxu1 %vm983_vm4, %v1289_v59  ;;  %v1510_v59 = vld [vmem:[%s2820_s15 + $0x48] sm:$0xff] }
 0x219   : > { %v2162_v62 = vpop.f32.mrb[30].mxu1  ;;  %2192 = vmatmul.mubr.msk.f32.gmra.mrb[44].mxu1 %vm983_vm4, %v1290_v7  ;;  %v1509_v7 = vld [vmem:[%s2820_s15 + $0x40] sm:$0xff] }
 0x21a   : > { %v1178_v8 = vadd.f32 %v2162_v62, %v2763_v34  ;;  %v1172_v11 = vpop.f32.mrb[31].mxu1 }
 0x21b   : > { %v1173_v12 = vadd.f32 %v2763_v34, %v1172_v11  ;;  %v1614_v34 = vld [vmem:[%s2949_s10] sm:$0x3]  ;;  %v1526_v11 = vshrl.u32 %v1510_v59, 31 }
 0x21c   : > { %vm1244_vm3 = vcmp.gt.f32.partialorder %v1178_v8, 0.0  ;;  %v1276_v13 = vmul.f32 2.0, %v1178_v8  ;;  %1617 = vperm.xlu0 %2325, %v1614_v34  }
 0x21d   : > { %vm1260_vm5 = vmand %vm1228_vm1, %vm1244_vm3  ;;  %vm1243_vm6 = vcmp.gt.f32.partialorder %v1173_v12, 0.0  ;;  %v1275_v14 = vmul.f32 2.0, %v1173_v12  ;;  %vm1535_vm1 = vcmp.eq.s32.totalorder %v1519_v38, 0 }
 0x21e   : > { %vm1259_vm7 = vmand %vm1227_vm2, %vm1243_vm6  ;;  %v1292_v17 = vsel %vm1260_vm5, %v1276_v13, 0.0  ;;  %v1525_v13 = vshrl.u32 %v1509_v7, 31 }
 0x21f   : > { %v1291_v15 = vsel %vm1259_vm7, %v1275_v14, 0.0  ;;  %vm1538_vm7 = vcmp.eq.s32.totalorder %v1522_v28, 0 }
 0x220   : > { %2194 = vmatprep.mubr.msk.f32.mxu1 %vm983_vm4, %v1291_v15 }
 0x221   : > { %2195 = vmatmul.mubr.msk.f32.gmra.mrb[46].mxu1 %vm983_vm4, %v1292_v17 }
 0x2bc   : > { %v2175_v25 = vpop.f32.mrb[32].mxu1 }
 0x2bd   : > { %v1428_v26 = vadd.f32 %v2175_v25, %v2827_v23  ;;  %v1422_v27 = vpop.f32.mrb[33].mxu1  ;;  %v1528_v25 = vshrl.u32 %v1512_v20, 31 }
 0x2be   : > { %v1423_v30 = vadd.f32 %v2827_v23, %v1422_v27  ;;  %v1527_v27 = vshrl.u32 %v1511_v18, 31 }
 0x2bf   : > { %vm1550_vm11 = vcmp.gt.f32.partialorder %v1428_v26, 0.0  ;;  %v1582_v9 = vmul.f32 2.0, %v1428_v26 }
 0x2c0   : > { %vm1566_vm12 = vmand %vm1534_vm9, %vm1550_vm11  ;;  %vm1549_vm13 = vcmp.gt.f32.partialorder %v1423_v30, 0.0  ;;  %v1581_v33 = vmul.f32 2.0, %v1423_v30 }
 0x2c1   : > { %v1598_v16 = vsel %vm1566_vm12, %v1582_v9, 0.0  ;;  %vm1565_vm14 = vmand %vm1533_vm10, %vm1549_vm13  ;;  %vm1540_vm13 = vcmp.eq.s32.totalorder %v1524_v60, 0 }
 0x2c2   : > { %v1597_v37 = vsel %vm1565_vm14, %v1581_v33, 0.0  ;;  %vm1539_vm14 = vcmp.eq.s32.totalorder %v1523_v63, 0 }
 0x2c3   : > { %v2249_v40 = vpack.c.bf16 %v1598_v16, %v1597_v37  ;;  %v1514_v16 = vld [vmem:[%s2820_s15 + $0x68] sm:$0xff]  ;;  %v1513_v37 = vld [vmem:[%s2820_s15 + $0x60] sm:$0xff] }
 0x2c4   : > { %v2178_v41 = vpop.f32.mrb[34].mxu1 }
 0x2c5   : > { %v1438_v42 = vadd.f32 %v2178_v41, %v2827_v23  ;;  %v1432_v43 = vpop.f32.mrb[35].mxu1  ;;  %2251 = vmatpush3.bf16.xpose.msk.msra.mxu0 %vm2835_vm15, %v2249_v40  ;;  %v1530_v41 = vshrl.u32 %v1514_v16, 31 }
 0x2c6   : > { %v1433_v29 = vadd.f32 %v2827_v23, %v1432_v43  ;;  %2252 = vmatprep.subr.bf16.mxu0 %v2444_v19  ;;  %v1529_v43 = vshrl.u32 %v1513_v37, 31 }
 0x2c7   : > { %vm1552_vm2 = vcmp.gt.f32.partialorder %v1438_v42, 0.0  ;;  %v1584_v36 = vmul.f32 2.0, %v1438_v42 }
 0x2c8   : > { %vm1568_vm3 = vmand %vm1536_vm0, %vm1552_vm2  ;;  %vm1551_vm5 = vcmp.gt.f32.partialorder %v1433_v29, 0.0  ;;  %v1583_v46 = vmul.f32 2.0, %v1433_v29 }
 0x2c9   : > { %v1600_v0 = vsel %vm1568_vm3, %v1584_v36, 0.0  ;;  %vm1567_vm6 = vmand %vm1535_vm1, %vm1551_vm5  ;;  %vm1542_vm5 = vcmp.eq.s32.totalorder %v1526_v11, 0 }
 0x2ca   : > { %v1599_v47 = vsel %vm1567_vm6, %v1583_v46, 0.0  ;;  %vm1541_vm6 = vcmp.eq.s32.totalorder %v1525_v13, 0 }
 0x2cb   : > { %v2253_v49 = vpack.c.bf16 %v1600_v0, %v1599_v47  ;;  %v1516_v0 = vld [vmem:[%s2820_s15 + $0x78] sm:$0xff]  ;;  %v1515_v47 = vld [vmem:[%s2820_s15 + $0x70] sm:$0xff] }
 0x2cc   : > { %v2181_v50 = vpop.f32.mrb[36].mxu1 }
 0x2cd   : > { %v1448_v51 = vadd.f32 %v2181_v50, %v2827_v23  ;;  %v1442_v52 = vpop.f32.mrb[37].mxu1  ;;  %2255 = vmatpush3.bf16.xpose.msk.msra.mxu0 %vm2835_vm15, %v2253_v49  ;;  %v1532_v50 = vshrl.u32 %v1516_v0, 31 }
 0x2ce   : > { %v1443_v53 = vadd.f32 %v2827_v23, %v1442_v52  ;;  %2256 = vmatprep.subr.bf16.mxu0 %v2444_v19  ;;  %v1531_v52 = vshrl.u32 %v1515_v47, 31 }
 0x2cf   : > { %vm1554_vm9 = vcmp.gt.f32.partialorder %v1448_v51, 0.0  ;;  %v1586_v55 = vmul.f32 2.0, %v1448_v51 }
 0x2d0   : > { %vm1570_vm10 = vmand %vm1538_vm7, %vm1554_vm9  ;;  %vm1553_vm11 = vcmp.gt.f32.partialorder %v1443_v53, 0.0  ;;  %v1585_v57 = vmul.f32 2.0, %v1443_v53 }
 0x2d1   : > { %v1602_v58 = vsel %vm1570_vm10, %v1586_v55, 0.0  ;;  %vm1569_vm12 = vmand %vm1537_vm8, %vm1553_vm11  ;;  %vm1544_vm11 = vcmp.eq.s32.totalorder %v1528_v25, 0 }
 0x2d2   : > { %v1601_v61 = vsel %vm1569_vm12, %v1585_v57, 0.0  ;;  %vm1543_vm12 = vcmp.eq.s32.totalorder %v1527_v27, 0 }
 0x2d3   : > { %v2257_v1 = vpack.c.bf16 %v1602_v58, %v1601_v61 }
 0x2d4   : > { %v2184_v2 = vpop.f32.mrb[38].mxu1 }
 0x2d5   : > { %v1458_v3 = vadd.f32 %v2184_v2, %v2827_v23  ;;  %v1452_v4 = vpop.f32.mrb[39].mxu1  ;;  %2259 = vmatpush3.bf16.xpose.msk.msra.mxu0 %vm2835_vm15, %v2257_v1  ;;  %v1613_v2 = vld [vmem:[%s2948_s9] sm:$0x3] }
 0x2d6   : > { %v1453_v5 = vadd.f32 %v2827_v23, %v1452_v4  ;;  %2260 = vmatprep.subr.bf16.mxu0 %v2444_v19 }
 0x2d7   : > { %vm1556_vm0 = vcmp.gt.f32.partialorder %v1458_v3, 0.0  ;;  %v1588_v6 = vmul.f32 2.0, %v1458_v3 }
 0x2d8   : > { %vm1572_vm1 = vmand %vm1540_vm13, %vm1556_vm0  ;;  %vm1555_vm2 = vcmp.gt.f32.partialorder %v1453_v5, 0.0  ;;  %v1587_v62 = vmul.f32 2.0, %v1453_v5 }
 0x2d9   : > { %v1604_v8 = vsel %vm1572_vm1, %v1588_v6, 0.0  ;;  %vm1571_vm3 = vmand %vm1539_vm14, %vm1555_vm2  ;;  %vm1546_vm2 = vcmp.eq.s32.totalorder %v1530_v41, 0 }
 0x2da   : > { %v1603_v12 = vsel %vm1571_vm3, %v1587_v62, 0.0  ;;  %vm1545_vm3 = vcmp.eq.s32.totalorder %v1529_v43, 0 }
 0x2db   : > { %v2261_v14 = vpack.c.bf16 %v1604_v8, %v1603_v12 }
 0x2dc   : > { %v2187_v15 = vpop.f32.mrb[40].mxu1 }
 0x2dd   : > { %v1468_v17 = vadd.f32 %v2187_v15, %v2827_v23  ;;  %v1462_v10 = vpop.f32.mrb[41].mxu1  ;;  %2263 = vmatpush3.bf16.xpose.msk.msra.mxu0 %vm2835_vm15, %v2261_v14 }
 0x2de   : > { %v1463_v34 = vadd.f32 %v2827_v23, %v1462_v10  ;;  %2264 = vmatprep.subr.bf16.mxu0 %v2444_v19 }
 0x2df   : > { %vm1558_vm7 = vcmp.gt.f32.partialorder %v1468_v17, 0.0  ;;  %v1590_v21 = vmul.f32 2.0, %v1468_v17 }
 0x2e0   : > { %vm1574_vm8 = vmand %vm1542_vm5, %vm1558_vm7  ;;  %vm1557_vm9 = vcmp.gt.f32.partialorder %v1463_v34, 0.0  ;;  %v1589_v22 = vmul.f32 2.0, %v1463_v34 }
 0x2e1   : > { %v1606_v24 = vsel %vm1574_vm8, %v1590_v21, 0.0  ;;  %vm1573_vm10 = vmand %vm1541_vm6, %vm1557_vm9  ;;  %vm1548_vm9 = vcmp.eq.s32.totalorder %v1532_v50, 0 }
 0x2e2   : > { %v1605_v26 = vsel %vm1573_vm10, %v1589_v22, 0.0  ;;  %vm1547_vm10 = vcmp.eq.s32.totalorder %v1531_v52, 0 }
 0x2e3   : > { %v2265_v30 = vpack.c.bf16 %v1606_v24, %v1605_v26 }
 0x2e4   : > { %v2190_v31 = vpop.f32.mrb[42].mxu1 }
 0x2e5   : > { %v1478_v9 = vadd.f32 %v2190_v31, %v2827_v23  ;;  %v1472_v32 = vpop.f32.mrb[43].mxu1  ;;  %2267 = vmatpush3.bf16.xpose.msk.msra.mxu0 %vm2835_vm15, %v2265_v30 }
 0x2e6   : > { %v1473_v33 = vadd.f32 %v2827_v23, %v1472_v32  ;;  %2268 = vmatprep.subr.bf16.mxu0 %v2444_v19 }
 0x2e7   : > { %vm1560_vm13 = vcmp.gt.f32.partialorder %v1478_v9, 0.0  ;;  %v1592_v35 = vmul.f32 2.0, %v1478_v9 }
 0x2e8   : > { %vm1576_vm14 = vmand %vm1544_vm11, %vm1560_vm13  ;;  %vm1559_vm0 = vcmp.gt.f32.partialorder %v1473_v33, 0.0  ;;  %v1591_v38 = vmul.f32 2.0, %v1473_v33 }
 0x2e9   : > { %v1608_v40 = vsel %vm1576_vm14, %v1592_v35, 0.0  ;;  %vm1575_vm1 = vmand %vm1543_vm12, %vm1559_vm0  ;;  %vm1741_vm0 = vcmask 1041408  }
 0x2ea   : > { %v1607_v42 = vsel %vm1575_vm1, %v1591_v38, 0.0 }
 0x2eb   : > { %v2269_v29 = vpack.c.bf16 %v1608_v40, %v1607_v42 }
 0x2ec   : > { %v2193_v44 = vpop.f32.mrb[44].mxu1 }
 0x2ed   : > { %v1488_v36 = vadd.f32 %v2193_v44, %v2827_v23  ;;  %v1482_v45 = vpop.f32.mrb[45].mxu1  ;;  %2271 = vmatpush3.bf16.xpose.msk.msra.mxu0 %vm2835_vm15, %v2269_v29 }
 0x2ee   : > { %v1483_v46 = vadd.f32 %v2827_v23, %v1482_v45  ;;  %2272 = vmatprep.subr.bf16.mxu0 %v2444_v19 }
 0x2ef   : > { %vm1562_vm5 = vcmp.gt.f32.partialorder %v1488_v36, 0.0  ;;  %v1594_v28 = vmul.f32 2.0, %v1488_v36 }
 0x2f0   : > { %vm1578_vm6 = vmand %vm1546_vm2, %vm1562_vm5  ;;  %vm1561_vm7 = vcmp.gt.f32.partialorder %v1483_v46, 0.0  ;;  %v1593_v48 = vmul.f32 2.0, %v1483_v46 }
 0x2f1   : > { %v1610_v49 = vsel %vm1578_vm6, %v1594_v28, 0.0  ;;  %vm1577_vm8 = vmand %vm1545_vm3, %vm1561_vm7 }
 0x2f2   : > { %v1609_v51 = vsel %vm1577_vm8, %v1593_v48, 0.0 }
 0x2f3   : > { %v2273_v53 = vpack.c.bf16 %v1610_v49, %v1609_v51 }
 0x2f4   : > { %v2196_v54 = vpop.f32.mrb[46].mxu1 }
 0x2f5   : > { %v1498_v55 = vadd.f32 %v2196_v54, %v2827_v23  ;;  %v1492_v56 = vpop.f32.mrb[47].mxu1  ;;  %2275 = vmatpush3.bf16.xpose.msk.msra.mxu0 %vm2835_vm15, %v2273_v53 }
 0x2f6   : > { %v1493_v57 = vadd.f32 %v2827_v23, %v1492_v56  ;;  %2276 = vmatprep.subr.bf16.mxu0 %v2444_v19  ;;  %v1618_v23 = vpop.permute.xlu0 %1617 }
 0x2f7   : > { %vm1564_vm11 = vcmp.gt.f32.partialorder %v1498_v55, 0.0  ;;  %v1596_v58 = vmul.f32 2.0, %v1498_v55 }
 0x2f8   : > { %vm1580_vm12 = vmand %vm1548_vm9, %vm1564_vm11  ;;  %vm1563_vm13 = vcmp.gt.f32.partialorder %v1493_v57, 0.0  ;;  %v1595_v60 = vmul.f32 2.0, %v1493_v57 }
 0x2f9   : > { %v1612_v61 = vsel %vm1580_vm12, %v1596_v58, 0.0  ;;  %vm1579_vm14 = vmand %vm1547_vm10, %vm1563_vm13 }
 0x2fa   : > { %v1611_v63 = vsel %vm1579_vm14, %v1595_v60, 0.0 }
 0x2fb   : > { %v2277_v1 = vpack.c.bf16 %v1612_v61, %v1611_v63 }
 0x2fd   : > { %2279 = vmatpush3.bf16.xpose.msk.msra.mxu0 %vm2835_vm15, %v2277_v1 }
 0x304   : > { %2230 = vmatmul.mubr.msk.f32.vlgmr.msra.gmra.mrb[32].mxu0 %vm983_vm4, %v1613_v2 }
 0x3d7   : > { %v1737_v19 = vpop.f32.mrb[32].mxu0 }
 0x3d8   : > { %v1738_v3 = vadd.f32 %v1737_v19, %v1618_v23  ;;  %v2231_v4 = vpop.f32.mrb[33].mxu0 }
 0x3da   : > { %v1742_v5 = vsel %vm1741_vm0, %v1738_v3, -inf }
 0x3db   : > { %v1743_v59 = vrot.slane %v1742_v5, 4 }
 0x3dd   : > { %v1744_v6 = vmax.f32 %v1742_v5, %v1743_v59 }
 0x3df   : > { %v1745_v7 = vrot.slane %v1744_v6, 2 }
 0x3e1   : > { %v1746_v62 = vmax.f32 %v1744_v6, %v1745_v7 }
 0x3e3   : > { %v1747_v8 = vrot.slane %v1746_v62, 1 }
 0x3e5   : > { %v1748_v39 = vmax.f32 %v1746_v62, %v1747_v8 }
 0x3e7   : > { %v1749_v11 = vsub.f32 %v1738_v3, %v1748_v39 }
 0x3e9   : > { %v1750_v12 = vmul.f32 1.442695, %v1749_v11 }
 0x3eb   : > { %2375 = vpow2.f32 %v1750_v12 }
 0x3f5   : > { %v2376_v13 = vpop.eup %2375 }
 0x3f6   : > { %v1752_v14 = vsel %vm1741_vm0, %v2376_v13, 0.0 }
 0x3f7   : > { %v1753_v15 = vrot.slane %v1752_v14, 4 }
 0x3f9   : > { %v1754_v17 = vadd.f32 %v1753_v15, %v1752_v14 }
 0x3fb   : > { %v1755_v10 = vrot.slane %v1754_v17, 2 }
 0x3fd   : > { %v1756_v34 = vadd.f32 %v1755_v10, %v1754_v17 }
 0x3ff   : > { %v1757_v20 = vrot.slane %v1756_v34, 1 }
 0x401   : > { %v1758_v21 = vadd.f32 %v1757_v20, %v1756_v34 }
 0x403   : > { %2377 = vlog2.f32 %v1758_v21 }
 0x40d   : > { %v2378_v18 = vpop.eup %2377 }
 0x40e   : > { %v1760_v22 = vmul.f32 0.6931472, %v2378_v18 }
 0x410   : > { %v1761_v24 = vadd.f32 %v1760_v22, %v1748_v39 }
 0x412   : > { %v1762_v25 = vsub.f32 %v1738_v3, %v1761_v24 }
 0x414   : > { %1763 = vst [vmem:[%s414_s12] sm:$0x3] %v1762_v25 }
 0x415   : > { %2392 = shalt.err (!%p2389_p3)
}
 0x416   : > { %s2393_s24 = scalar_lea.hbm %s2897_s26, 32  ;;  %s2397_s14 = scalar_lea.hbm %s2950_s11, 64 }
 0x417   : > { %p2394_p4 = scmp.ne.s32.totalorder %s2897_s26, %s2393_s24  ;;  %p2398_p9 = scmp.lt.u32.totalorder %s2897_s26, %s2950_s11 }
 0x418   : > { %p2399_p10 = scmp.lt.u32.totalorder %s2397_s14, %s2393_s24  ;;  %p2401_p12 = scmp.lt.u32.totalorder %s2393_s24, %s2897_s26 }
 0x419   : > { %p2395_p7 = pnand %p2394_p4, %p2547_p5 }
 0x41a   : > { %p2400_p11 = por %p2399_p10, %p2398_p9 }
 0x41b   : > { %p2396_p8 = pneg %p2395_p7 }
 0x41c   : > { %p2402_p13 = por %p2401_p12, %p2400_p11 }
 0x41e   : > { %p2403_p0 = pnand %p2402_p13, %p2396_p8 }
 0x420   : > { %2406 = shalt.err (!%p2403_p0)
}
 0x421   : > { %2281 = dma.vmem_to_hbm [thread:$0]  (%p2547_p5), %s2899_s13, 32, %s2897_s26, %s1765_s16  }
 0x422 PF: > { %p2287_p1 = scmp.ge.s32.totalorder %s2441_s20, 2  ;;  %s1790_s29 = sand.u32 1, %s2429_s17  }
 0x423   : > { %s1791_s22 = scalar_lea.sflag [#allocation3], %s1790_s29 }
 0x424   : > { %p2284_p2 = pnand %p2287_p1, %p2551_p6 }
 0x426   : > { %2424 = dma.done.wait (!%p2284_p2), %s1791_s22, 32  }
 0x427   : > { %2426 = vsyncadd (!%p2284_p2), %s1791_s22, 4294967264  ;;  %s2956_s25 = sld [smem:[#allocation5_spill]]  ;;  %p21_p3 = scmp.ge.s32.totalorder %s2534_s23, 4  }
 0x428   : > { %s2957_s17 = smov %s2433_s18  ;;  %s2958_s18 = smov %s2437_s19 }
 0x429   : > { %s2960_s20 = smov %s2534_s23  ;;  %23 = sbr.rel (!%p21_p3) target bundleno = 3 (0x3), region = 105 }
 0x42d   : > { %s2959_s19 = smov %s2956_s25 }
 0x430   :  { %1796 = vsyncpa [#allocation3], 1 }
 0x431   :  { %1798 = vsyncpa [#allocation3 + $0x1], 1 }

</bundles_post_ra>
